<compile_context>
chip_gen: v6e
topology: v6e:2x2x1
jax: 0.10.0
libtpu: 0.0.40
codegen_flags: <defaults>
</compile_context>

<pallas_src>
import functools

import jax
import jax.numpy as jnp
from jax.experimental import pallas as pl
from jax.experimental.pallas import tpu as pltpu

MAX_LOGSIGMA = 10.0
MIN_LOGSIGMA = -10.0
BN_EPS = 1e-5
LANE = 128
SUBLANE = 8
NEG_BIG = -1e30


def _round_up(x, m):
    return (x + m - 1) // m * m


def _vmem_capacity_bytes():
    """Generation-aware VMEM capacity (v5e/v6e: 128 MiB, v7x: 64 MiB)."""
    try:
        cap = getattr(pltpu.get_tpu_info(), "vmem_capacity_bytes", None)
        if cap:
            return int(cap)
    except Exception:
        pass
    return 64 * 1024 * 1024  # conservative fallback (v7x per-TC)


# --------------------------------------------------------------------------- #
# Kernels
# --------------------------------------------------------------------------- #
def _encoder_kernel(x_ref, w1_ref, bn_scale_ref, bn_shift_ref, wheads_ref,
                    bheads_ref, delta_ref, theta_ref, logsig_ref, h_acc,
                    *, t_pad, tile_g, compute_dtype):
    """grid = (B_tiles, G_tiles); G is the (inner) reduction axis."""
    g = pl.program_id(1)

    @pl.when(g == 0)
    def _():
        h_acc[...] = jnp.zeros_like(h_acc)

    goff = pl.multiple_of(g * tile_g, tile_g)
    w1_blk = w1_ref[pl.ds(goff, tile_g), :]                    # resident, sliced
    h_acc[...] += jnp.dot(x_ref[...], w1_blk, preferred_element_type=jnp.float32)

    @pl.when(g == pl.num_programs(1) - 1)
    def _():
        # Folded eval-mode BatchNorm + ReLU (dropout is identity in eval).
        h = jnp.maximum(h_acc[...] * bn_scale_ref[...] + bn_shift_ref[...], 0.0)
        # Fused mu|logsigma heads: one [H, 2*t_pad] matmul.
        heads = jnp.dot(h.astype(compute_dtype), wheads_ref[...],
                        preferred_element_type=jnp.float32) + bheads_ref[...]
        mu = heads[:, :t_pad]                 # padded lanes carry -1e30 via bias
        logsigma = jnp.clip(heads[:, t_pad:], MIN_LOGSIGMA, MAX_LOGSIGMA)
        m = jnp.max(mu, axis=-1, keepdims=True)
        e = jnp.exp(mu - m)                   # exactly 0 on padded topic lanes
        theta = e / jnp.sum(e, axis=-1, keepdims=True)
        delta_ref[...] = mu
        theta_ref[...] = theta
        logsig_ref[...] = logsigma


def _decoder_stats_kernel(theta_ref, onehot_ref, x_ref, beta_ref, bbias_ref,
                          lse_ref, nll_ref, m_s, s_s, xl_s, xs_s,
                          *, tile_g, compute_dtype):
    """Online LSE over gene tiles + fused per-row NLL (no [B,G] writeback)."""
    g = pl.program_id(1)

    @pl.when(g == 0)
    def _():
        m_s[...] = jnp.full_like(m_s, -jnp.inf)
        s_s[...] = jnp.zeros_like(s_s)
        xl_s[...] = jnp.zeros_like(xl_s)
        xs_s[...] = jnp.zeros_like(xs_s)

    goff = pl.multiple_of(g * tile_g, tile_g)
    beta_blk = beta_ref[:, pl.ds(goff, tile_g)]                # resident, sliced
    bbias_blk = bbias_ref[:, pl.ds(goff, tile_g)]              # resident, sliced
    theta_c = theta_ref[...].astype(compute_dtype)
    logit = jnp.dot(theta_c, beta_blk, preferred_element_type=jnp.float32)
    logit = logit + jnp.dot(onehot_ref[...], bbias_blk,
                            preferred_element_type=jnp.float32)

    x = x_ref[...].astype(jnp.float32)
    xl_s[...] += jnp.sum(x * logit, axis=-1, keepdims=True)
    xs_s[...] += jnp.sum(x, axis=-1, keepdims=True)

    m_new = jnp.maximum(m_s[...], jnp.max(logit, axis=-1, keepdims=True))
    s_s[...] = (s_s[...] * jnp.exp(m_s[...] - m_new)
                + jnp.sum(jnp.exp(logit - m_new), axis=-1, keepdims=True))
    m_s[...] = m_new

    @pl.when(g == pl.num_programs(1) - 1)
    def _():
        lse = m_s[...] + jnp.log(s_s[...])
        lse_ref[...] = lse
        # -(x*recon).sum(-1) = lse*sum(x) - sum(x*logit)
        nll_ref[...] = lse * xs_s[...] - xl_s[...]


def _decoder_recon_kernel(theta_ref, onehot_ref, lse_ref, beta_ref, bbias_ref,
                          recon_ref, *, tile_g, compute_dtype, recon_dtype):
    """Lane-dense recon_log = logit - lse writeback, tiled over (B, G)."""
    g = pl.program_id(1)
    goff = pl.multiple_of(g * tile_g, tile_g)
    beta_blk = beta_ref[:, pl.ds(goff, tile_g)]
    bbias_blk = bbias_ref[:, pl.ds(goff, tile_g)]
    theta_c = theta_ref[...].astype(compute_dtype)
    logit = jnp.dot(theta_c, beta_blk, preferred_element_type=jnp.float32)
    logit = logit + jnp.dot(onehot_ref[...], bbias_blk,
                            preferred_element_type=jnp.float32)
    recon_ref[...] = (logit - lse_ref[...]).astype(recon_dtype)


# --------------------------------------------------------------------------- #
# Wrapper
# --------------------------------------------------------------------------- #
def _fold_bn(params):
    scale = params["bn_gamma"] / jnp.sqrt(params["bn_var"] + BN_EPS)
    shift = (params["b1"] - params["bn_mean"]) * scale + params["bn_beta"]
    return scale.astype(jnp.float32), shift.astype(jnp.float32)


def _vmem_need_bytes(tb, tg, g_pad, h, t_pad, nb, wsize, rsize):
    f32 = 4
    enc = ((g_pad * h + h * 2 * t_pad) * wsize + (2 * h + 2 * t_pad) * f32
           + 2 * tb * tg * wsize            # x stream (double buffered)
           + tb * h * f32                   # h accumulator
           + 6 * tb * t_pad * f32           # outputs (double buffered)
           + 4 * tb * t_pad * f32)          # temporaries
    dec_res = (t_pad + nb) * g_pad * wsize
    dec_stats = (dec_res
                 + 2 * (tb * t_pad * f32 + tb * nb * wsize + tb * tg * wsize)
                 + 3 * tb * tg * f32
                 + 16 * tb * f32)
    dec_recon = (dec_res
                 + 2 * (tb * t_pad * f32 + tb * nb * wsize + tb * f32)
                 + 2 * tb * tg * rsize
                 + 2 * tb * tg * f32)
    return max(enc, dec_stats, dec_recon)


def _resident_spec(shape, single_buffer):
    """Constant-index (resident) weight spec; single-buffered when supported."""
    idx = lambda i, g: (0, 0)
    if single_buffer:
        return pl.BlockSpec(shape, idx, pipeline_mode=pl.Buffered(1))
    return pl.BlockSpec(shape, idx)


def _forward_impl(x, batch_indices, params, *, compute_dtype, recon_dtype,
                  interpret, single_buffer_residents):
    B, G = x.shape
    H = params["w1"].shape[1]
    T = params["alpha"].shape[0]
    NB = params["batch_bias"].shape[0]
    t_pad = _round_up(T, LANE)
    wsize = jnp.dtype(compute_dtype).itemsize
    rsize = jnp.dtype(recon_dtype).itemsize

    # ---- Generation-aware VMEM budget + tile selection (TB floored, G tiled) ----
    cap = _vmem_capacity_bytes()
    budget = int(cap * 0.6)
    vmem_limit = int(cap * 0.9)

    if B >= 512:
        TB = 256
    elif B >= 128:
        TB = 128
    else:
        TB = _round_up(B, SUBLANE)

    g128 = _round_up(G, LANE)
    tg = LANE
    for cand in (2048, 1024, 512, 256, 128):
        if cand <= g128 and _vmem_need_bytes(
                TB, cand, _round_up(G, cand), H, t_pad, NB, wsize, rsize) <= budget:
            tg = cand
            break

    G_pad = _round_up(G, tg)
    B_pad = _round_up(B, TB)
    nB, nG = B_pad // TB, G_pad // tg

    # ---- Parameter packing (cheap, plain XLA, once per call) ----
    bn_scale, bn_shift = _fold_bn(params)

    wheads = jnp.concatenate(
        [jnp.pad(params["wmu"], ((0, 0), (0, t_pad - T))),
         jnp.pad(params["wls"], ((0, 0), (0, t_pad - T)))],
        axis=1).astype(compute_dtype)                                  # [H, 2*t_pad]
    # Padded mu lanes get -1e30 baked into the bias -> softmax mask for free.
    bheads = jnp.concatenate(
        [jnp.pad(params["bmu"], ((0, 0), (0, t_pad - T)), constant_values=NEG_BIG),
         jnp.pad(params["bls"], ((0, 0), (0, t_pad - T)))],
        axis=1).astype(jnp.float32)                                    # [1, 2*t_pad]

    # beta = alpha @ rho hoisted; rho never enters VMEM.
    beta = jnp.dot(params["alpha"], params["rho"])                     # [T, G]
    beta_c = jnp.pad(beta, ((0, t_pad - T), (0, G_pad - G))).astype(compute_dtype)

    # Padded gene columns of batch_bias carry -1e30 -> masked out of the LSE.
    bbias_c = jnp.pad(params["batch_bias"], ((0, 0), (0, G_pad - G)),
                      constant_values=NEG_BIG).astype(compute_dtype)   # [NB, G_pad]

    w1_c = jnp.pad(params["w1"], ((0, G_pad - G), (0, 0))).astype(compute_dtype)
    x_p = jnp.pad(x, ((0, B_pad - B), (0, G_pad - G))).astype(compute_dtype)
    onehot = jax.nn.one_hot(batch_indices, NB, dtype=compute_dtype)
    onehot_p = jnp.pad(onehot, ((0, B_pad - B), (0, 0)))               # [B_pad, NB]

    res = lambda shape: _resident_spec(shape, single_buffer_residents)
    cparams_red = pltpu.CompilerParams(
        dimension_semantics=("parallel", "arbitrary"), vmem_limit_bytes=vmem_limit)
    cparams_par = pltpu.CompilerParams(
        dimension_semantics=("parallel", "parallel"), vmem_limit_bytes=vmem_limit)

    # ---- Call 1: encoder (h accumulated over G tiles, heads + softmax at end) ----
    enc_grid = pltpu.PrefetchScalarGridSpec(
        num_scalar_prefetch=0,
        grid=(nB, nG),
        in_specs=[
            pl.BlockSpec((TB, tg), lambda i, g: (i, g)),     # x stream
            res((G_pad, H)),                                 # w1 (resident)
            res((1, H)),                                     # bn scale
            res((1, H)),                                     # bn shift
            res((H, 2 * t_pad)),                             # fused head weights
            res((1, 2 * t_pad)),                             # fused head biases
        ],
        out_specs=[
            pl.BlockSpec((TB, t_pad), lambda i, g: (i, 0)),  # delta
            pl.BlockSpec((TB, t_pad), lambda i, g: (i, 0)),  # theta
            pl.BlockSpec((TB, t_pad), lambda i, g: (i, 0)),  # logsigma
        ],
        scratch_shapes=[pltpu.VMEM((TB, H), jnp.float32)],
    )
    delta, theta, logsig = pl.pallas_call(
        functools.partial(_encoder_kernel, t_pad=t_pad, tile_g=tg,
                          compute_dtype=compute_dtype),
        out_shape=(jax.ShapeDtypeStruct((B_pad, t_pad), jnp.float32),) * 3,
        grid_spec=enc_grid,
        compiler_params=cparams_red,
        interpret=interpret,
    )(x_p, w1_c, bn_scale, bn_shift, wheads, bheads)

    # ---- Call 2: decoder stats (online LSE + fused NLL; [B,1] outputs only) ----
    stats_grid = pltpu.PrefetchScalarGridSpec(
        num_scalar_prefetch=0,
        grid=(nB, nG),
        in_specs=[
            pl.BlockSpec((TB, t_pad), lambda i, g: (i, 0)),  # theta
            pl.BlockSpec((TB, NB), lambda i, g: (i, 0)),     # one-hot batch id
            pl.BlockSpec((TB, tg), lambda i, g: (i, g)),     # x stream (for NLL)
            res((t_pad, G_pad)),                             # beta (resident)
            res((NB, G_pad)),                                # batch bias (resident)
        ],
        out_specs=[
            pl.BlockSpec((TB, 1), lambda i, g: (i, 0)),      # lse
            pl.BlockSpec((TB, 1), lambda i, g: (i, 0)),      # per-row nll
        ],
        scratch_shapes=[pltpu.VMEM((TB, 1), jnp.float32)] * 4,
    )
    lse, nll_rows = pl.pallas_call(
        functools.partial(_decoder_stats_kernel, tile_g=tg,
                          compute_dtype=compute_dtype),
        out_shape=(jax.ShapeDtypeStruct((B_pad, 1), jnp.float32),
                   jax.ShapeDtypeStruct((B_pad, 1), jnp.float32)),
        grid_spec=stats_grid,
        compiler_params=cparams_red,
        interpret=interpret,
    )(theta, onehot_p, x_p, beta_c, bbias_c)

    # ---- Call 3: lane-dense bf16 recon_log writeback ----
    recon_grid = pltpu.PrefetchScalarGridSpec(
        num_scalar_prefetch=0,
        grid=(nB, nG),
        in_specs=[
            pl.BlockSpec((TB, t_pad), lambda i, g: (i, 0)),  # theta
            pl.BlockSpec((TB, NB), lambda i, g: (i, 0)),     # one-hot batch id
            pl.BlockSpec((TB, 1), lambda i, g: (i, 0)),      # lse
            res((t_pad, G_pad)),                             # beta (resident)
            res((NB, G_pad)),                                # batch bias (resident)
        ],
        out_specs=pl.BlockSpec((TB, tg), lambda i, g: (i, g)),
    )
    recon = pl.pallas_call(
        functools.partial(_decoder_recon_kernel, tile_g=tg,
                          compute_dtype=compute_dtype, recon_dtype=recon_dtype),
        out_shape=jax.ShapeDtypeStruct((B_pad, G_pad), recon_dtype),
        grid_spec=recon_grid,
        compiler_params=cparams_par,
        interpret=interpret,
    )(theta, onehot_p, lse, beta_c, bbias_c)

    return {
        "delta": delta[:B, :T],
        "theta": theta[:B, :T],
        "recon_log": recon[:B, :G],
        "logsigma_q_delta": logsig[:B, :T],
        "nll": jnp.sum(nll_rows[:B, 0]),
    }


def cl_scetm_forward(x, batch_indices, params, *, compute_dtype=jnp.bfloat16,
                     recon_dtype=jnp.bfloat16, interpret=False):
    """x: [B, n_genes] f32, batch_indices: [B] int32, params: dict of arrays."""
    try:
        return _forward_impl(x, batch_indices, params, compute_dtype=compute_dtype,
                             recon_dtype=recon_dtype, interpret=interpret,
                             single_buffer_residents=True)
    except Exception:
        # pl.Buffered(1) unsupported on this JAX/Mosaic version -> let the
        # resident weights fall back to default double-buffering.
        return _forward_impl(x, batch_indices, params, compute_dtype=compute_dtype,
                             recon_dtype=recon_dtype, interpret=interpret,
                             single_buffer_residents=False)


# --------------------------------------------------------------------------- #
# Params + pure-JAX reference
# --------------------------------------------------------------------------- #
def init_params(key, n_genes, n_topics, hidden, gene_emb_dim, n_batches):
    ks = jax.random.split(key, 10)
    s = 0.05
    return {
        "w1": jax.random.normal(ks[0], (n_genes, hidden), jnp.float32) * s,
        "b1": jax.random.normal(ks[1], (1, hidden), jnp.float32) * s,
        "bn_gamma": jnp.ones((1, hidden), jnp.float32),
        "bn_beta": jnp.zeros((1, hidden), jnp.float32),
        "bn_mean": jax.random.normal(ks[2], (1, hidden), jnp.float32) * s,
        "bn_var": jnp.ones((1, hidden), jnp.float32) + 0.1,
        "wmu": jax.random.normal(ks[3], (hidden, n_topics), jnp.float32) * s,
        "bmu": jax.random.normal(ks[4], (1, n_topics), jnp.float32) * s,
        "wls": jax.random.normal(ks[5], (hidden, n_topics), jnp.float32) * s,
        "bls": jax.random.normal(ks[6], (1, n_topics), jnp.float32) * s,
        "alpha": jax.random.normal(ks[7], (n_topics, gene_emb_dim), jnp.float32) * s,
        "rho": jax.random.normal(ks[8], (gene_emb_dim, n_genes), jnp.float32) * s,
        "batch_bias": jax.random.normal(ks[9], (n_batches, n_genes), jnp.float32) * s,
    }


def reference_forward(x, batch_indices, params, compute_dtype=jnp.bfloat16):
    """Pure-JAX reference of the same eval-mode forward (mirrors bf16 casts)."""
    c = lambda a: a.astype(compute_dtype).astype(jnp.float32)
    bn_scale, bn_shift = _fold_bn(params)
    h = jnp.dot(c(x), c(params["w1"])) * bn_scale + bn_shift
    h = jnp.maximum(h, 0.0)
    hc = c(h)
    mu = jnp.dot(hc, c(params["wmu"])) + params["bmu"]
    ls = jnp.clip(jnp.dot(hc, c(params["wls"])) + params["bls"],
                  MIN_LOGSIGMA, MAX_LOGSIGMA)
    theta = jax.nn.softmax(mu, axis=-1)
    beta = c(jnp.dot(params["alpha"], params["rho"]))
    logit = jnp.dot(c(theta), beta) + c(params["batch_bias"])[batch_indices]
    recon_log = jax.nn.log_softmax(logit, axis=-1)
    nll = -jnp.sum(x * recon_log)
    return mu, theta, recon_log, ls, nll


if __name__ == "__main__":
    # Small shapes consistent with the module: x [batch, n_genes]
    B, G, H, T, E, NB = 8, 256, 128, 16, 64, 2

    key = jax.random.PRNGKey(0)
    k_x, k_p, k_b = jax.random.split(key, 3)

    x = jax.random.poisson(k_x, 2.0, (B, G)).astype(jnp.float32)
    batch_indices = jax.random.randint(k_b, (B,), 0, NB, dtype=jnp.int32)
    params = init_params(k_p, n_genes=G, n_topics=T, hidden=H,
                         gene_emb_dim=E, n_batches=NB)

    out = cl_scetm_forward(x, batch_indices, params)
    jax.block_until_ready(out)

    ref_mu, ref_theta, ref_recon, ref_ls, ref_nll = reference_forward(
        x, batch_indices, params)

    assert out["delta"].shape == (B, T)
    assert out["theta"].shape == (B, T)
    assert out["recon_log"].shape == (B, G)
    assert out["logsigma_q_delta"].shape == (B, T)
    assert jnp.allclose(out["delta"], ref_mu, atol=2e-3, rtol=2e-3)
    assert jnp.allclose(out["theta"], ref_theta, atol=2e-3, rtol=2e-3)
    assert jnp.allclose(out["logsigma_q_delta"], ref_ls, atol=2e-3, rtol=2e-3)
    # recon_log is emitted in bf16 (traffic optimization) -> bf16-level tolerance.
    assert jnp.allclose(out["recon_log"].astype(jnp.float32), ref_recon,
                        atol=5e-2, rtol=1e-2)
    # fused NLL is computed in f32 from logits/lse inside the kernel.
    assert jnp.allclose(out["nll"], ref_nll, rtol=1e-2, atol=1.0)

    print("KERNEL_OK")
</pallas_src>

<mosaic_0001>
module attributes {stable_mosaic.version = 11 : i64} {
  func.func @_encoder_kernel(%arg0: i32, %arg1: i32, %arg2: memref<8x256xbf16, #tpu.memory_space<vmem>>, %arg3: memref<256x128xbf16, #tpu.memory_space<vmem>>, %arg4: memref<1x128xf32, #tpu.memory_space<vmem>>, %arg5: memref<1x128xf32, #tpu.memory_space<vmem>>, %arg6: memref<128x256xbf16, #tpu.memory_space<vmem>>, %arg7: memref<1x256xf32, #tpu.memory_space<vmem>>, %arg8: memref<8x128xf32, #tpu.memory_space<vmem>>, %arg9: memref<8x128xf32, #tpu.memory_space<vmem>>, %arg10: memref<8x128xf32, #tpu.memory_space<vmem>>, %arg11: memref<8x128xf32, #tpu.memory_space<vmem>>) attributes {dimension_semantics = [#tpu.dimension_semantics<parallel>, #tpu.dimension_semantics<arbitrary>], iteration_bounds = array<i64: 1, 1>, scalar_prefetch = 0 : i64, scratch_operands = 1 : i64, tpu.core_type = #tpu.core_type<tc>, window_params = [{transform_indices = @transform_0, window_bounds = array<i64: 8, 256>}, {pipeline_mode = #tpu.pipeline_mode<synchronous>, transform_indices = @transform_1, window_bounds = array<i64: 256, 128>}, {pipeline_mode = #tpu.pipeline_mode<synchronous>, transform_indices = @transform_2, window_bounds = array<i64: 1, 128>}, {pipeline_mode = #tpu.pipeline_mode<synchronous>, transform_indices = @transform_3, window_bounds = array<i64: 1, 128>}, {pipeline_mode = #tpu.pipeline_mode<synchronous>, transform_indices = @transform_4, window_bounds = array<i64: 128, 256>}, {pipeline_mode = #tpu.pipeline_mode<synchronous>, transform_indices = @transform_5, window_bounds = array<i64: 1, 256>}, {transform_indices = @transform_6, window_bounds = array<i64: 8, 128>}, {transform_indices = @transform_7, window_bounds = array<i64: 8, 128>}, {transform_indices = @transform_8, window_bounds = array<i64: 8, 128>}]} {
    %c0_i32 = arith.constant 0 : i32
    %0 = arith.cmpi eq, %arg1, %c0_i32 : i32
    %1 = arith.extui %0 : i1 to i32
    %c0_i32_0 = arith.constant 0 : i32
    %2 = arith.cmpi ne, %1, %c0_i32_0 : i32
    scf.if %2 {
      %cst_9 = arith.constant 0.000000e+00 : f32
      %15 = vector.broadcast %cst_9 : f32 to vector<8x128xf32>
      %c0_10 = arith.constant 0 : index
      %c0_11 = arith.constant 0 : index
      %16 = vector.load %arg11[%c0_10, %c0_11] : memref<8x128xf32, #tpu.memory_space<vmem>>, vector<8x128xf32>
      tpu.vector_store %arg11[%c0_10, %c0_11], %15 {strides = array<i32>} : memref<8x128xf32, #tpu.memory_space<vmem>>, vector<8x128xf32>,
    } else {
    }
    %c256_i32 = arith.constant 256 : i32
    %3 = arith.muli %arg1, %c256_i32 : i32
    %4 = tpu.assume_multiple %3, 256 : i32
    %5 = arith.index_cast %4 : i32 to index
    %c0 = arith.constant 0 : index
    %6 = vector.load %arg3[%5, %c0] : memref<256x128xbf16, #tpu.memory_space<vmem>>, vector<256x128xbf16>
    %c0_1 = arith.constant 0 : index
    %c0_2 = arith.constant 0 : index
    %7 = vector.load %arg11[%c0_1, %c0_2] : memref<8x128xf32, #tpu.memory_space<vmem>>, vector<8x128xf32>
    %c0_3 = arith.constant 0 : index
    %c0_4 = arith.constant 0 : index
    %8 = vector.load %arg2[%c0_3, %c0_4] : memref<8x256xbf16, #tpu.memory_space<vmem>>, vector<8x256xbf16>
    %cst = arith.constant dense<0.000000e+00> : vector<8x128xf32>
    %9 = tpu.matmul %8, %6, %cst {dimension_numbers = #tpu.dot_dimension_numbers<[1], [0], [0], [1], [0, 0, 1, 1], [], []>} : vector<8x256xbf16>, vector<256x128xbf16>, vector<8x128xf32> -> vector<8x128xf32>
    %10 = arith.addf %7, %9 : vector<8x128xf32>
    %c0_5 = arith.constant 0 : index
    %c0_6 = arith.constant 0 : index
    %11 = vector.load %arg11[%c0_5, %c0_6] : memref<8x128xf32, #tpu.memory_space<vmem>>, vector<8x128xf32>
    tpu.vector_store %arg11[%c0_5, %c0_6], %10 {strides = array<i32>} : memref<8x128xf32, #tpu.memory_space<vmem>>, vector<8x128xf32>,
    %c0_i32_7 = arith.constant 0 : i32
    %12 = arith.cmpi eq, %arg1, %c0_i32_7 : i32
    %13 = arith.extui %12 : i1 to i32
    %c0_i32_8 = arith.constant 0 : i32
    %14 = arith.cmpi ne, %13, %c0_i32_8 : i32
    scf.if %14 {
      %c0_9 = arith.constant 0 : index
      %c0_10 = arith.constant 0 : index
      %15 = vector.load %arg11[%c0_9, %c0_10] : memref<8x128xf32, #tpu.memory_space<vmem>>, vector<8x128xf32>
      %c0_11 = arith.constant 0 : index
      %c0_12 = arith.constant 0 : index
      %16 = vector.load %arg4[%c0_11, %c0_12] : memref<1x128xf32, #tpu.memory_space<vmem>>, vector<1x128xf32>
      %17 = vector.broadcast %16 : vector<1x128xf32> to vector<8x128xf32>
      %18 = arith.mulf %15, %17 : vector<8x128xf32>
      %c0_13 = arith.constant 0 : index
      %c0_14 = arith.constant 0 : index
      %19 = vector.load %arg5[%c0_13, %c0_14] : memref<1x128xf32, #tpu.memory_space<vmem>>, vector<1x128xf32>
      %20 = vector.broadcast %19 : vector<1x128xf32> to vector<8x128xf32>
      %21 = arith.addf %18, %20 : vector<8x128xf32>
      %cst_15 = arith.constant 0.000000e+00 : f32
      %22 = vector.broadcast %cst_15 : f32 to vector<8x128xf32>
      %23 = arith.maximumf %21, %22 : vector<8x128xf32>
      %24 = arith.truncf %23 : vector<8x128xf32> to vector<8x128xbf16>
      %c0_16 = arith.constant 0 : index
      %c0_17 = arith.constant 0 : index
      %25 = vector.load %arg6[%c0_16, %c0_17] : memref<128x256xbf16, #tpu.memory_space<vmem>>, vector<128x256xbf16>
      %cst_18 = arith.constant dense<0.000000e+00> : vector<8x256xf32>
      %26 = tpu.matmul %24, %25, %cst_18 {dimension_numbers = #tpu.dot_dimension_numbers<[1], [0], [0], [1], [0, 0, 1, 1], [], []>} : vector<8x128xbf16>, vector<128x256xbf16>, vector<8x256xf32> -> vector<8x256xf32>
      %c0_19 = arith.constant 0 : index
      %c0_20 = arith.constant 0 : index
      %27 = vector.load %arg7[%c0_19, %c0_20] : memref<1x256xf32, #tpu.memory_space<vmem>>, vector<1x256xf32>
      %28 = vector.broadcast %27 : vector<1x256xf32> to vector<8x256xf32>
      %29 = arith.addf %26, %28 : vector<8x256xf32>
      %30 = vector.extract_strided_slice %29 {offsets = [0, 0], sizes = [8, 128], strides = [1, 1]} : vector<8x256xf32> to vector<8x128xf32>
      %31 = vector.extract_strided_slice %29 {offsets = [0, 128], sizes = [8, 128], strides = [1, 1]} : vector<8x256xf32> to vector<8x128xf32>
      %cst_21 = arith.constant -1.000000e+01 : f32
      %cst_22 = arith.constant 1.000000e+01 : f32
      %32 = vector.broadcast %cst_21 : f32 to vector<8x128xf32>
      %33 = arith.maximumf %32, %31 : vector<8x128xf32>
      %34 = vector.broadcast %cst_22 : f32 to vector<8x128xf32>
      %35 = arith.minimumf %34, %33 : vector<8x128xf32>
      %cst_23 = arith.constant dense<0xFF800000> : vector<8xf32>
      %36 = vector.multi_reduction <maximumf>, %30, %cst_23 [1] : vector<8x128xf32> to vector<8xf32>
      %37 = vector.shape_cast %36 : vector<8xf32> to vector<8x1xf32>
      %38 = vector.broadcast %37 : vector<8x1xf32> to vector<8x128xf32>
      %39 = arith.subf %30, %38 : vector<8x128xf32>
      %40 = math.exp %39 : vector<8x128xf32>
      %cst_24 = arith.constant dense<0.000000e+00> : vector<8xf32>
      %41 = vector.multi_reduction <add>, %40, %cst_24 [1] : vector<8x128xf32> to vector<8xf32>
      %42 = vector.shape_cast %41 : vector<8xf32> to vector<8x1xf32>
      %43 = vector.broadcast %42 : vector<8x1xf32> to vector<8x128xf32>
      %44 = arith.divf %40, %43 : vector<8x128xf32>
      %c0_25 = arith.constant 0 : index
      %c0_26 = arith.constant 0 : index
      %45 = vector.load %arg8[%c0_25, %c0_26] : memref<8x128xf32, #tpu.memory_space<vmem>>, vector<8x128xf32>
      tpu.vector_store %arg8[%c0_25, %c0_26], %30 {strides = array<i32>} : memref<8x128xf32, #tpu.memory_space<vmem>>, vector<8x128xf32>,
      %c0_27 = arith.constant 0 : index
      %c0_28 = arith.constant 0 : index
      %46 = vector.load %arg9[%c0_27, %c0_28] : memref<8x128xf32, #tpu.memory_space<vmem>>, vector<8x128xf32>
      tpu.vector_store %arg9[%c0_27, %c0_28], %44 {strides = array<i32>} : memref<8x128xf32, #tpu.memory_space<vmem>>, vector<8x128xf32>,
      %c0_29 = arith.constant 0 : index
      %c0_30 = arith.constant 0 : index
      %47 = vector.load %arg10[%c0_29, %c0_30] : memref<8x128xf32, #tpu.memory_space<vmem>>, vector<8x128xf32>
      tpu.vector_store %arg10[%c0_29, %c0_30], %35 {strides = array<i32>} : memref<8x128xf32, #tpu.memory_space<vmem>>, vector<8x128xf32>,
    } else {
    }
    return
  }
  func.func @transform_0(%arg0: i32, %arg1: i32) -> (i32, i32) {
    %c0_i32 = arith.constant 0 : i32
    return %arg0, %arg1 : i32, i32
  }
  func.func @transform_1(%arg0: i32, %arg1: i32) -> (i32, i32) {
    %c0_i32 = arith.constant 0 : i32
    %c0_i32_0 = arith.constant 0 : i32
    %c0_i32_1 = arith.constant 0 : i32
    return %c0_i32, %c0_i32_0 : i32, i32
  }
  func.func @transform_2(%arg0: i32, %arg1: i32) -> (i32, i32) {
    %c0_i32 = arith.constant 0 : i32
    %c0_i32_0 = arith.constant 0 : i32
    %c0_i32_1 = arith.constant 0 : i32
    return %c0_i32, %c0_i32_0 : i32, i32
  }
  func.func @transform_3(%arg0: i32, %arg1: i32) -> (i32, i32) {
    %c0_i32 = arith.constant 0 : i32
    %c0_i32_0 = arith.constant 0 : i32
    %c0_i32_1 = arith.constant 0 : i32
    return %c0_i32, %c0_i32_0 : i32, i32
  }
  func.func @transform_4(%arg0: i32, %arg1: i32) -> (i32, i32) {
    %c0_i32 = arith.constant 0 : i32
    %c0_i32_0 = arith.constant 0 : i32
    %c0_i32_1 = arith.constant 0 : i32
    return %c0_i32, %c0_i32_0 : i32, i32
  }
  func.func @transform_5(%arg0: i32, %arg1: i32) -> (i32, i32) {
    %c0_i32 = arith.constant 0 : i32
    %c0_i32_0 = arith.constant 0 : i32
    %c0_i32_1 = arith.constant 0 : i32
    return %c0_i32, %c0_i32_0 : i32, i32
  }
  func.func @transform_6(%arg0: i32, %arg1: i32) -> (i32, i32) {
    %c0_i32 = arith.constant 0 : i32
    %c0_i32_0 = arith.constant 0 : i32
    return %arg0, %c0_i32 : i32, i32
  }
  func.func @transform_7(%arg0: i32, %arg1: i32) -> (i32, i32) {
    %c0_i32 = arith.constant 0 : i32
    %c0_i32_0 = arith.constant 0 : i32
    return %arg0, %c0_i32 : i32, i32
  }
  func.func @transform_8(%arg0: i32, %arg1: i32) -> (i32, i32) {
    %c0_i32 = arith.constant 0 : i32
    %c0_i32_0 = arith.constant 0 : i32
    return %arg0, %c0_i32 : i32, i32
  }
}

module attributes {stable_mosaic.version = 11 : i64} {
  func.func @_encoder_kernel(%arg0: i32, %arg1: i32, %arg2: memref<8x256xbf16, #tpu.memory_space<vmem>>, %arg3: memref<256x128xbf16, #tpu.memory_space<vmem>>, %arg4: memref<1x128xf32, #tpu.memory_space<vmem>>, %arg5: memref<1x128xf32, #tpu.memory_space<vmem>>, %arg6: memref<128x256xbf16, #tpu.memory_space<vmem>>, %arg7: memref<1x256xf32, #tpu.memory_space<vmem>>, %arg8: memref<8x128xf32, #tpu.memory_space<vmem>>, %arg9: memref<8x128xf32, #tpu.memory_space<vmem>>, %arg10: memref<8x128xf32, #tpu.memory_space<vmem>>, %arg11: memref<8x128xf32, #tpu.memory_space<vmem>>) attributes {dimension_semantics = [#tpu.dimension_semantics<parallel>, #tpu.dimension_semantics<arbitrary>], iteration_bounds = array<i64: 1, 1>, scalar_prefetch = 0 : i64, scratch_operands = 1 : i64, tpu.core_type = #tpu.core_type<tc>, window_params = [{transform_indices = @transform_0, window_bounds = array<i64: 8, 256>}, {pipeline_mode = #tpu.pipeline_mode<synchronous>, transform_indices = @transform_1, window_bounds = array<i64: 256, 128>}, {pipeline_mode = #tpu.pipeline_mode<synchronous>, transform_indices = @transform_2, window_bounds = array<i64: 1, 128>}, {pipeline_mode = #tpu.pipeline_mode<synchronous>, transform_indices = @transform_3, window_bounds = array<i64: 1, 128>}, {pipeline_mode = #tpu.pipeline_mode<synchronous>, transform_indices = @transform_4, window_bounds = array<i64: 128, 256>}, {pipeline_mode = #tpu.pipeline_mode<synchronous>, transform_indices = @transform_5, window_bounds = array<i64: 1, 256>}, {transform_indices = @transform_6, window_bounds = array<i64: 8, 128>}, {transform_indices = @transform_7, window_bounds = array<i64: 8, 128>}, {transform_indices = @transform_8, window_bounds = array<i64: 8, 128>}]} {
    %c0_i32 = arith.constant 0 : i32
    %0 = arith.cmpi eq, %arg1, %c0_i32 : i32
    %1 = arith.extui %0 : i1 to i32
    %c0_i32_0 = arith.constant 0 : i32
    %2 = arith.cmpi ne, %1, %c0_i32_0 : i32
    scf.if %2 {
      %cst_9 = arith.constant 0.000000e+00 : f32
      %15 = vector.broadcast %cst_9 : f32 to vector<8x128xf32>
      %c0_10 = arith.constant 0 : index
      %c0_11 = arith.constant 0 : index
      %16 = vector.load %arg11[%c0_10, %c0_11] : memref<8x128xf32, #tpu.memory_space<vmem>>, vector<8x128xf32>
      tpu.vector_store %arg11[%c0_10, %c0_11], %15 {strides = array<i32>} : memref<8x128xf32, #tpu.memory_space<vmem>>, vector<8x128xf32>,
    } else {
    }
    %c256_i32 = arith.constant 256 : i32
    %3 = arith.muli %arg1, %c256_i32 : i32
    %4 = tpu.assume_multiple %3, 256 : i32
    %5 = arith.index_cast %4 : i32 to index
    %c0 = arith.constant 0 : index
    %6 = vector.load %arg3[%5, %c0] : memref<256x128xbf16, #tpu.memory_space<vmem>>, vector<256x128xbf16>
    %c0_1 = arith.constant 0 : index
    %c0_2 = arith.constant 0 : index
    %7 = vector.load %arg11[%c0_1, %c0_2] : memref<8x128xf32, #tpu.memory_space<vmem>>, vector<8x128xf32>
    %c0_3 = arith.constant 0 : index
    %c0_4 = arith.constant 0 : index
    %8 = vector.load %arg2[%c0_3, %c0_4] : memref<8x256xbf16, #tpu.memory_space<vmem>>, vector<8x256xbf16>
    %cst = arith.constant dense<0.000000e+00> : vector<8x128xf32>
    %9 = tpu.matmul %8, %6, %cst {dimension_numbers = #tpu.dot_dimension_numbers<[1], [0], [0], [1], [0, 0, 1, 1], [], []>} : vector<8x256xbf16>, vector<256x128xbf16>, vector<8x128xf32> -> vector<8x128xf32>
    %10 = arith.addf %7, %9 : vector<8x128xf32>
    %c0_5 = arith.constant 0 : index
    %c0_6 = arith.constant 0 : index
    %11 = vector.load %arg11[%c0_5, %c0_6] : memref<8x128xf32, #tpu.memory_space<vmem>>, vector<8x128xf32>
    tpu.vector_store %arg11[%c0_5, %c0_6], %10 {strides = array<i32>} : memref<8x128xf32, #tpu.memory_space<vmem>>, vector<8x128xf32>,
    %c0_i32_7 = arith.constant 0 : i32
    %12 = arith.cmpi eq, %arg1, %c0_i32_7 : i32
    %13 = arith.extui %12 : i1 to i32
    %c0_i32_8 = arith.constant 0 : i32
    %14 = arith.cmpi ne, %13, %c0_i32_8 : i32
    scf.if %14 {
      %c0_9 = arith.constant 0 : index
      %c0_10 = arith.constant 0 : index
      %15 = vector.load %arg11[%c0_9, %c0_10] : memref<8x128xf32, #tpu.memory_space<vmem>>, vector<8x128xf32>
      %c0_11 = arith.constant 0 : index
      %c0_12 = arith.constant 0 : index
      %16 = vector.load %arg4[%c0_11, %c0_12] : memref<1x128xf32, #tpu.memory_space<vmem>>, vector<1x128xf32>
      %17 = vector.broadcast %16 : vector<1x128xf32> to vector<8x128xf32>
      %18 = arith.mulf %15, %17 : vector<8x128xf32>
      %c0_13 = arith.constant 0 : index
      %c0_14 = arith.constant 0 : index
      %19 = vector.load %arg5[%c0_13, %c0_14] : memref<1x128xf32, #tpu.memory_space<vmem>>, vector<1x128xf32>
      %20 = vector.broadcast %19 : vector<1x128xf32> to vector<8x128xf32>
      %21 = arith.addf %18, %20 : vector<8x128xf32>
      %cst_15 = arith.constant 0.000000e+00 : f32
      %22 = vector.broadcast %cst_15 : f32 to vector<8x128xf32>
      %23 = arith.maximumf %21, %22 : vector<8x128xf32>
      %24 = arith.truncf %23 : vector<8x128xf32> to vector<8x128xbf16>
      %c0_16 = arith.constant 0 : index
      %c0_17 = arith.constant 0 : index
      %25 = vector.load %arg6[%c0_16, %c0_17] : memref<128x256xbf16, #tpu.memory_space<vmem>>, vector<128x256xbf16>
      %cst_18 = arith.constant dense<0.000000e+00> : vector<8x256xf32>
      %26 = tpu.matmul %24, %25, %cst_18 {dimension_numbers = #tpu.dot_dimension_numbers<[1], [0], [0], [1], [0, 0, 1, 1], [], []>} : vector<8x128xbf16>, vector<128x256xbf16>, vector<8x256xf32> -> vector<8x256xf32>
      %c0_19 = arith.constant 0 : index
      %c0_20 = arith.constant 0 : index
      %27 = vector.load %arg7[%c0_19, %c0_20] : memref<1x256xf32, #tpu.memory_space<vmem>>, vector<1x256xf32>
      %28 = vector.broadcast %27 : vector<1x256xf32> to vector<8x256xf32>
      %29 = arith.addf %26, %28 : vector<8x256xf32>
      %30 = vector.extract_strided_slice %29 {offsets = [0, 0], sizes = [8, 128], strides = [1, 1]} : vector<8x256xf32> to vector<8x128xf32>
      %31 = vector.extract_strided_slice %29 {offsets = [0, 128], sizes = [8, 128], strides = [1, 1]} : vector<8x256xf32> to vector<8x128xf32>
      %cst_21 = arith.constant -1.000000e+01 : f32
      %cst_22 = arith.constant 1.000000e+01 : f32
      %32 = vector.broadcast %cst_21 : f32 to vector<8x128xf32>
      %33 = arith.maximumf %32, %31 : vector<8x128xf32>
      %34 = vector.broadcast %cst_22 : f32 to vector<8x128xf32>
      %35 = arith.minimumf %34, %33 : vector<8x128xf32>
      %cst_23 = arith.constant dense<0xFF800000> : vector<8xf32>
      %36 = vector.multi_reduction <maximumf>, %30, %cst_23 [1] : vector<8x128xf32> to vector<8xf32>
      %37 = vector.shape_cast %36 : vector<8xf32> to vector<8x1xf32>
      %38 = vector.broadcast %37 : vector<8x1xf32> to vector<8x128xf32>
      %39 = arith.subf %30, %38 : vector<8x128xf32>
      %40 = math.exp %39 : vector<8x128xf32>
      %cst_24 = arith.constant dense<0.000000e+00> : vector<8xf32>
      %41 = vector.multi_reduction <add>, %40, %cst_24 [1] : vector<8x128xf32> to vector<8xf32>
      %42 = vector.shape_cast %41 : vector<8xf32> to vector<8x1xf32>
      %43 = vector.broadcast %42 : vector<8x1xf32> to vector<8x128xf32>
      %44 = arith.divf %40, %43 : vector<8x128xf32>
      %c0_25 = arith.constant 0 : index
      %c0_26 = arith.constant 0 : index
      %45 = vector.load %arg8[%c0_25, %c0_26] : memref<8x128xf32, #tpu.memory_space<vmem>>, vector<8x128xf32>
      tpu.vector_store %arg8[%c0_25, %c0_26], %30 {strides = array<i32>} : memref<8x128xf32, #tpu.memory_space<vmem>>, vector<8x128xf32>,
      %c0_27 = arith.constant 0 : index
      %c0_28 = arith.constant 0 : index
      %46 = vector.load %arg9[%c0_27, %c0_28] : memref<8x128xf32, #tpu.memory_space<vmem>>, vector<8x128xf32>
      tpu.vector_store %arg9[%c0_27, %c0_28], %44 {strides = array<i32>} : memref<8x128xf32, #tpu.memory_space<vmem>>, vector<8x128xf32>,
      %c0_29 = arith.constant 0 : index
      %c0_30 = arith.constant 0 : index
      %47 = vector.load %arg10[%c0_29, %c0_30] : memref<8x128xf32, #tpu.memory_space<vmem>>, vector<8x128xf32>
      tpu.vector_store %arg10[%c0_29, %c0_30], %35 {strides = array<i32>} : memref<8x128xf32, #tpu.memory_space<vmem>>, vector<8x128xf32>,
    } else {
    }
    return
  }
  func.func @transform_0(%arg0: i32, %arg1: i32) -> (i32, i32) {
    %c0_i32 = arith.constant 0 : i32
    return %arg0, %arg1 : i32, i32
  }
  func.func @transform_1(%arg0: i32, %arg1: i32) -> (i32, i32) {
    %c0_i32 = arith.constant 0 : i32
    %c0_i32_0 = arith.constant 0 : i32
    %c0_i32_1 = arith.constant 0 : i32
    return %c0_i32, %c0_i32_0 : i32, i32
  }
  func.func @transform_2(%arg0: i32, %arg1: i32) -> (i32, i32) {
    %c0_i32 = arith.constant 0 : i32
    %c0_i32_0 = arith.constant 0 : i32
    %c0_i32_1 = arith.constant 0 : i32
    return %c0_i32, %c0_i32_0 : i32, i32
  }
  func.func @transform_3(%arg0: i32, %arg1: i32) -> (i32, i32) {
    %c0_i32 = arith.constant 0 : i32
    %c0_i32_0 = arith.constant 0 : i32
    %c0_i32_1 = arith.constant 0 : i32
    return %c0_i32, %c0_i32_0 : i32, i32
  }
  func.func @transform_4(%arg0: i32, %arg1: i32) -> (i32, i32) {
    %c0_i32 = arith.constant 0 : i32
    %c0_i32_0 = arith.constant 0 : i32
    %c0_i32_1 = arith.constant 0 : i32
    return %c0_i32, %c0_i32_0 : i32, i32
  }
  func.func @transform_5(%arg0: i32, %arg1: i32) -> (i32, i32) {
    %c0_i32 = arith.constant 0 : i32
    %c0_i32_0 = arith.constant 0 : i32
    %c0_i32_1 = arith.constant 0 : i32
    return %c0_i32, %c0_i32_0 : i32, i32
  }
  func.func @transform_6(%arg0: i32, %arg1: i32) -> (i32, i32) {
    %c0_i32 = arith.constant 0 : i32
    %c0_i32_0 = arith.constant 0 : i32
    return %arg0, %c0_i32 : i32, i32
  }
  func.func @transform_7(%arg0: i32, %arg1: i32) -> (i32, i32) {
    %c0_i32 = arith.constant 0 : i32
    %c0_i32_0 = arith.constant 0 : i32
    return %arg0, %c0_i32 : i32, i32
  }
  func.func @transform_8(%arg0: i32, %arg1: i32) -> (i32, i32) {
    %c0_i32 = arith.constant 0 : i32
    %c0_i32_0 = arith.constant 0 : i32
    return %arg0, %c0_i32 : i32, i32
  }
}

</mosaic_0001>

<bundles_post_ra>
// kernel: tpu_custom_call.1
= control target key start
LH: loop header
LB: loop body
LE: loop exit
PB: predicated region body
PF: predicated region fallthrough
CT: control target
= control target key end

     0   :  { %14 = vsyncpa [#allocation4], 0  ;;  %s814_s0 = inlined_call_operand.hbm [shape: bf16[8,256], index: 0, kind: input, shape index: {}]   ;;  %s815_s1 = inlined_call_operand.hbm [shape: bf16[256,128], index: 1, kind: input, shape index: {}]   ;;  %s816_s2 = inlined_call_operand.vmem [shape: f32[1,128], index: 2, kind: input, shape index: {}]   ;;  %s817_s3 = inlined_call_operand.vmem [shape: f32[1,128], index: 3, kind: input, shape index: {}]   ;;  %s818_s4 = inlined_call_operand.hbm [shape: bf16[128,256], index: 4, kind: input, shape index: {}]   ;;  %s819_s5 = inlined_call_operand.vmem [shape: f32[1,256], index: 5, kind: input, shape index: {}]   ;;  %s820_s6 = inlined_call_operand.hbm [shape: f32[8,128], index: 6, kind: output, shape index: {0}]   ;;  %s821_s7 = inlined_call_operand.hbm [shape: f32[8,128], index: 7, kind: output, shape index: {1}]   ;;  %s822_s8 = inlined_call_operand.hbm [shape: f32[8,128], index: 8, kind: output, shape index: {2}]  }
   0x1   :  { %15 = vsyncpa [#allocation7], 0 }
   0x2   :  { %16 = vsyncpa [#allocation5], 0 }
   0x3   :  { %17 = vsyncpa [#allocation11], 0  ;;  %s731_s27 = smov [#allocation6]  }
   0x4   :  { %s33_s28 = sshll.u32 %s731_s27, 4  ;;  %s34_s28 = int_to_ptr.vmem [resolvable:$true] %s33_s28 }
   0x5   :  { %s611_s29 = scalar_lea.vmem %s34_s28, 2048  ;;  %p616_p1 = scmp.lt.s32.totalorder %s34_s28, %s34_s28 }
   0x6   :  { %p612_p0 = scmp.ne.s32.totalorder %s34_s28, %s611_s29  ;;  %p617_p2 = scmp.lt.s32.totalorder %s611_s29, %s611_s29 }
   0x8   :  { %p618_p3 = por %p617_p2, %p616_p1 }
   0xa   :  { %p619_p4 = pnand %p618_p3, %p612_p0 }
   0xc   :  { %622 = shalt.err (!%p619_p4)
}
   0xd   :  { %s732_s30 = smov 64   ;;  %s733_s9 = smov 4  }
   0xe   :  { %39 = dma.hbm_to_vmem [thread:$0]  %s815_s1, 2048, %s34_s28, [#allocation7], %s732_s30, %s732_s30, %s733_s9  }
   0xf   :  { %s734_s12 = smov [#allocation3]   ;;  %s735_s14 = smov [#allocation8]  }
  0x10   :  { %s24_s13 = sshll.u32 %s734_s12, 4  ;;  %s49_s15 = sshll.u32 %s735_s14, 4  ;;  %s25_s13 = int_to_ptr.vmem [resolvable:$true] %s24_s13  ;;  %s50_s15 = int_to_ptr.vmem [resolvable:$true] %s49_s15 }
  0x11   :  { %s631_s16 = scalar_lea.vmem %s25_s13, 128  ;;  %p636_p6 = scmp.lt.s32.totalorder %s25_s13, %s25_s13 }
  0x12   :  { %p632_p5 = scmp.ne.s32.totalorder %s25_s13, %s631_s16  ;;  %p637_p7 = scmp.lt.s32.totalorder %s631_s16, %s631_s16 }
  0x14   :  { %p638_p8 = por %p637_p7, %p636_p6 }
  0x16   :  { %p639_p9 = pnand %p638_p8, %p632_p5 }
  0x18   :  { %642 = shalt.err (!%p639_p9)
}
  0x19   :  { %27 = dma.hbm_to_vmem [thread:$0]  %s814_s0, 128, %s25_s13, [#allocation4]  }
  0x1a   :  { %s651_s19 = scalar_lea.vmem %s50_s15, 2048  ;;  %p656_p11 = scmp.lt.s32.totalorder %s50_s15, %s50_s15 }
  0x1b   :  { %p652_p10 = scmp.ne.s32.totalorder %s50_s15, %s651_s19  ;;  %p657_p12 = scmp.lt.s32.totalorder %s651_s19, %s651_s19 }
  0x1d   :  { %p658_p13 = por %p657_p12, %p656_p11 }
  0x1f   :  { %p659_p0 = pnand %p658_p13, %p652_p10 }
  0x21   :  { %662 = shalt.err (!%p659_p0)
}
  0x22   :  { %s736_s1 = smov 128   ;;  %s737_s20 = smov 8  }
  0x23   :  { %55 = dma.hbm_to_vmem [thread:$0]  %s818_s4, 2048, %s50_s15, [#allocation7], %s736_s1, %s736_s1, %s737_s20  }
  0x24   :  { %723 = dma.done.wait [#allocation4], 128  }
  0x25   :  { %724 = vsyncadd [#allocation4], 4294967168 }
  0x26   :  { %725 = dma.done.wait [#allocation7], 4096  }
  0x27   :  { %726 = vsyncadd [#allocation7], 4294963200  ;;  %v557_v0 = vld [vmem:[#allocation6 + $0x78] sm:$0xff]   ;;  %v559_v2 = vld [vmem:[#allocation6 + $0x70] sm:$0xff]   ;;  %v738_v35 = vmov 0   ;;  %v297_v47 = vlaneseq }
  0x28   :  { %v558_v1 = vld [vmem:[#allocation6 + $0x38] sm:$0xff]   ;;  %524 = vmatprep.subr.bf16.mxu0 %v557_v0  ;;  %v560_v3 = vld [vmem:[#allocation6 + $0x30] sm:$0xff]   ;;  %v561_v4 = vld [vmem:[#allocation6 + $0x68] sm:$0xff]   ;;  %419 = vmatprep.mubr.bf16.mxu1 %v738_v35 }
  0x29   :  { %525 = vmatpush3.bf16.msra.mxu0 %v558_v1  ;;  %v562_v5 = vld [vmem:[#allocation6 + $0x28] sm:$0xff]   ;;  %v563_v6 = vld [vmem:[#allocation6 + $0x60] sm:$0xff]   ;;  %v565_v8 = vld [vmem:[#allocation6 + $0x58] sm:$0xff]   ;;  %v298_v48 = vshrl.u32 %v297_v47, 7 }
  0x2a   :  { %526 = vmatprep.subr.bf16.mxu0 %v559_v2  ;;  %v564_v7 = vld [vmem:[#allocation6 + $0x20] sm:$0xff]   ;;  %v566_v9 = vld [vmem:[#allocation6 + $0x18] sm:$0xff]   ;;  %v567_v10 = vld [vmem:[#allocation6 + $0x50] sm:$0xff]  }
  0x2b   :  { %v111_v11 = vld [vmem:[#allocation3] sm:$0xff]  ;;  %v578_v15 = vld [vmem:[#allocation8 + $0x64] ss:$8 sps:$4 sm:$0xff]   ;;  %v568_v16 = vld [vmem:[#allocation6 + $0x10] sm:$0xff]   ;;  %v299_v49 = vsub.s32 0, %v298_v48  ;;  %v303_v51 = vsub.s32 1, %v298_v48 }
  0x2c   :  { %v488_v12 = vcombine.high %v111_v11, %v111_v11  ;;  %v575_v13 = vld [vmem:[#allocation8 + $0x74] ss:$8 sps:$4 sm:$0xff]   ;;  %v577_v14 = vld [vmem:[#allocation8 + $0x70] ss:$8 sps:$4 sm:$0xff]   ;;  %v569_v17 = vld [vmem:[#allocation6 + $0x48] sm:$0xff]   ;;  %v487_v26 = vcombine.low %v111_v11, %v111_v11 }
  0x2d   :  { %527 = vmatpush3.bf16.msra.mxu0 %v560_v3  ;;  %387 = vmatprep.subr.bf16.mxu1 %v575_v13  ;;  %v570_v18 = vld [vmem:[#allocation6 + $0x8] sm:$0xff]   ;;  %v571_v20 = vld [vmem:[#allocation6 + $0x40] sm:$0xff]   ;;  %v581_v21 = vld [vmem:[#allocation8 + $0x54] ss:$8 sps:$4 sm:$0xff]  }
  0x2e   :  { %528 = vmatprep.subr.bf16.mxu0 %v561_v4  ;;  %247 = vmatprep.mubr.bf16.mxu0 %v488_v12  ;;  %v580_v19 = vld [vmem:[#allocation8 + $0x60] ss:$8 sps:$4 sm:$0xff]   ;;  %v583_v22 = vld [vmem:[#allocation8 + $0x50] ss:$8 sps:$4 sm:$0xff]   ;;  %v584_v23 = vld [vmem:[#allocation8 + $0x44] ss:$8 sps:$4 sm:$0xff]  }
  0x2f   :  { %388 = vmatpush1.bf16.msra.mxu1 %v577_v14  ;;  %v572_v24 = vld [vmem:[#allocation6] sm:$0xff]   ;;  %v587_v27 = vld [vmem:[#allocation8 + $0x34] ss:$8 sps:$4 sm:$0xff]   ;;  %v589_v28 = vld [vmem:[#allocation8 + $0x30] ss:$8 sps:$4 sm:$0xff]  }
  0x30   :  { %389 = vmatprep.subr.bf16.mxu1 %v578_v15  ;;  %v586_v25 = vld [vmem:[#allocation8 + $0x40] ss:$8 sps:$4 sm:$0xff]   ;;  %v590_v29 = vld [vmem:[#allocation8 + $0x24] ss:$8 sps:$4 sm:$0xff]   ;;  %v593_v31 = vld [vmem:[#allocation8 + $0x14] ss:$8 sps:$4 sm:$0xff]  }
  0x31   :  { %529 = vmatpush3.bf16.msra.mxu0 %v562_v5  ;;  %v592_v30 = vld [vmem:[#allocation8 + $0x20] ss:$8 sps:$4 sm:$0xff]   ;;  %v595_v32 = vld [vmem:[#allocation8 + $0x10] ss:$8 sps:$4 sm:$0xff]   ;;  %v596_v33 = vld [vmem:[#allocation8 + $0x4] ss:$8 sps:$4 sm:$0xff]  }
  0x32   :  { %530 = vmatprep.subr.bf16.mxu0 %v563_v6  ;;  %v598_v34 = vld [vmem:[#allocation8] ss:$8 sps:$4 sm:$0xff]   ;;  %v505_v38 = vld [vmem:[%s816_s2] ss:$0 sm:$0xff]  ;;  %s739_s2 = smov [#allocation9]  }
  0x33   :  { %390 = vmatpush1.bf16.msra.mxu1 %v580_v19  ;;  %v506_v40 = vld [vmem:[%s817_s3] ss:$0 sm:$0xff]  ;;  %s448_s3 = sshll.u32 %s739_s2, 4  ;;  %s449_s3 = int_to_ptr.vmem [resolvable:$true] %s448_s3 }
  0x34   :  { %391 = vmatprep.subr.bf16.mxu1 %v581_v21  ;;  %v295_v50 = vld [vmem:[%s819_s5] sm:$0x3]  ;;  %s663_s5 = scalar_lea.vmem %s449_s3, 128  ;;  %p668_p2 = scmp.lt.s32.totalorder %s449_s3, %s449_s3 }
  0x35   :  { %531 = vmatpush3.bf16.msra.mxu0 %v564_v7  ;;  %v300_v52 = vrot.slane %v295_v50, %v299_v49  ;;  %v304_v53 = vrot.slane %v295_v50, %v303_v51  ;;  %p664_p1 = scmp.ne.s32.totalorder %s449_s3, %s663_s5  ;;  %p669_p3 = scmp.lt.s32.totalorder %s663_s5, %s663_s5 }
  0x36   :  { %532 = vmatprep.subr.bf16.mxu0 %v565_v8 }
  0x37   :  { %392 = vmatpush1.bf16.msra.mxu1 %v583_v22  ;;  %p670_p4 = por %p669_p3, %p668_p2 }
  0x38   :  { %393 = vmatprep.subr.bf16.mxu1 %v584_v23 }
  0x39   :  { %533 = vmatpush3.bf16.msra.mxu0 %v566_v9  ;;  %p671_p5 = pnand %p670_p4, %p664_p1 }
  0x3a   :  { %534 = vmatprep.subr.bf16.mxu0 %v567_v10 }
  0x3b   :  { %394 = vmatpush1.bf16.msra.mxu1 %v586_v25 }
  0x3c   :  { %395 = vmatprep.subr.bf16.mxu1 %v587_v27 }
  0x3d   :  { %535 = vmatpush3.bf16.msra.mxu0 %v568_v16 }
  0x3e   :  { %536 = vmatprep.subr.bf16.mxu0 %v569_v17 }
  0x3f   :  { %396 = vmatpush1.bf16.msra.mxu1 %v589_v28 }
  0x40   :  { %397 = vmatprep.subr.bf16.mxu1 %v590_v29 }
  0x41   :  { %537 = vmatpush3.bf16.msra.mxu0 %v570_v18 }
  0x42   :  { %538 = vmatprep.subr.bf16.mxu0 %v571_v20 }
  0x43   :  { %398 = vmatpush1.bf16.msra.mxu1 %v592_v30 }
  0x44   :  { %399 = vmatprep.subr.bf16.mxu1 %v593_v31 }
  0x45   :  { %539 = vmatpush3.bf16.msra.mxu0 %v572_v24 }
  0x47   :  { %400 = vmatpush1.bf16.msra.mxu1 %v595_v32 }
  0x48   :  { %248 = vmatmul.mubr.bf16.vlgmr.msra.gmra.mxu0 %v487_v26  ;;  %401 = vmatprep.subr.bf16.mxu1 %v596_v33 }
  0x4b   :  { %402 = vmatpush1.bf16.msra.mxu1 %v598_v34 }
 0x108   :  { %v540_v36 = vpop.f32.mrf.mxu0 }
 0x10a   :  { %v541_v37 = vpop.f32.mrf.mxu0 }
 0x10b   :  { %v542_v39 = vadd.f32 %v541_v37, %v540_v36 }
 0x10c   :  { %v543_v41 = vpop.f32.mrf.mxu0 }
 0x10d   :  { %v268_v42 = vmul.f32 %v542_v39, %v505_v38 }
 0x10e   :  { %v544_v43 = vpop.f32.mrf.mxu0 }
 0x10f   :  { %v276_v44 = vadd.f32 %v506_v40, %v268_v42 }
 0x111   :  { %v277_v45 = vmax.f32 %v276_v44, 0.0 }
 0x113   :  { %v278_v46 = vpack.c.bf16 %v277_v45, %v277_v45 }
 0x115   :  { %420 = vmatmul.mubr.bf16.vlgmr.msra.gmra.mxu1 %v278_v46 }
 0x1d5   :  { %v421_v54 = vpop.f32.mrf.mxu1 }
 0x1d6   :  { %v422_v55 = vadd.f32 %v421_v54, %v300_v52 }
 0x1d7   :  { %v423_v56 = vpop.f32.mrf.mxu1 }
 0x1d8   :  { %439 = vst [vmem:[#allocation9] sm:$0xff] %v422_v55  ;;  %v424_v57 = vadd.f32 %v423_v56, %v304_v53  ;;  %430 = vmax.xlane.f32.xlu0 %v422_v55 }
 0x1d9   :  { %v425_v58 = vpop.f32.mrf.mxu1 }
 0x1da   :  { %v523_v59 = vclamps-f32 %v424_v57, 10.0 }
 0x1db   :  { %v426_v60 = vpop.f32.mrf.mxu1 }
 0x1dc   :  { %441 = vst [vmem:[#allocation12] sm:$0xff] %v523_v59 }
 0x261   :  { %v431_v61 = vpop.xlane.xlu0 %430 }
 0x262   :  { %v432_v62 = vsub.f32 %v422_v55, %v431_v61 }
 0x264   :  { %v433_v63 = vmul.f32 1.442695, %v432_v62 }
 0x266   :  { %599 = vpow2.f32 %v433_v63 }
 0x273   :  { %v600_v0 = vpop.eup %599 }
 0x274   :  { %435 = vadd.xlane.f32.xlu0 %v600_v0 }
 0x275   :  { %674 = shalt.err (!%p671_p5)
}
 0x276   :  { %451 = dma.vmem_to_hbm [thread:$0]  %s449_s3, 128, %s820_s6, [#allocation5]  }
 0x277   :  { %s740_s29 = smov [#allocation10]   ;;  %s741_s9 = smov [#allocation12]  }
 0x278   :  { %s458_s30 = sshll.u32 %s740_s29, 4  ;;  %s468_s10 = sshll.u32 %s741_s9, 4  ;;  %s459_s30 = int_to_ptr.vmem [resolvable:$true] %s458_s30  ;;  %s469_s10 = int_to_ptr.vmem [resolvable:$true] %s468_s10 }
 0x279   :  { %s683_s11 = scalar_lea.vmem %s459_s30, 128  ;;  %p688_p7 = scmp.lt.s32.totalorder %s459_s30, %s459_s30 }
 0x27a   :  { %p684_p6 = scmp.ne.s32.totalorder %s459_s30, %s683_s11  ;;  %p689_p8 = scmp.lt.s32.totalorder %s683_s11, %s683_s11 }
 0x27c   :  { %p690_p9 = por %p689_p8, %p688_p7 }
 0x27e   :  { %p691_p10 = pnand %p690_p9, %p684_p6 }
 0x2fd   :  { %v436_v1 = vpop.xlane.xlu0 %435 }
 0x2fe   :  { %601 = vrcp.f32 %v436_v1 }
 0x30b   :  { %v602_v2 = vpop.eup %601 }
 0x30c   :  { %v438_v3 = vmul.f32 %v602_v2, %v600_v0 }
 0x30e   :  { %440 = vst [vmem:[#allocation10] sm:$0xff] %v438_v3 }
 0x30f   :  { %694 = shalt.err (!%p691_p10)
}
 0x310   :  { %461 = dma.vmem_to_hbm [thread:$0]  %s459_s30, 128, %s821_s7, [#allocation11]  }
 0x311   :  { %s703_s13 = scalar_lea.vmem %s469_s10, 128  ;;  %p708_p12 = scmp.lt.s32.totalorder %s469_s10, %s469_s10 }
 0x312   :  { %p704_p11 = scmp.ne.s32.totalorder %s469_s10, %s703_s13  ;;  %p709_p13 = scmp.lt.s32.totalorder %s703_s13, %s703_s13 }
 0x314   :  { %p710_p0 = por %p709_p13, %p708_p12 }
 0x316   :  { %p711_p1 = pnand %p710_p0, %p704_p11 }
 0x318   :  { %714 = shalt.err (!%p711_p1)
}
 0x319   :  { %471 = dma.vmem_to_hbm [thread:$0]  %s469_s10, 128, %s822_s8, [#allocation11]  }
 0x31a   :  { %727 = dma.done.wait [#allocation5], 128  }
 0x31b   :  { %728 = vsyncadd [#allocation5], 4294967168 }
 0x31c   :  { %729 = dma.done.wait [#allocation11], 256  }
 0x31d   :  { %730 = vsyncadd [#allocation11], 4294967040 }
 0x31e   :  { %481 = vsyncpa [#allocation4], 1 }
 0x31f   :  { %482 = vsyncpa [#allocation7], 1 }
 0x320   :  { %483 = vsyncpa [#allocation5], 1 }
 0x321   :  { %484 = vsyncpa [#allocation11], 1 }

// kernel: tpu_custom_call.1
= control target key start
LH: loop header
LB: loop body
LE: loop exit
PB: predicated region body
PF: predicated region fallthrough
CT: control target
= control target key end

     0   :  { %14 = vsyncpa [#allocation4], 0  ;;  %s814_s0 = inlined_call_operand.hbm [shape: bf16[8,256], index: 0, kind: input, shape index: {}]   ;;  %s815_s1 = inlined_call_operand.hbm [shape: bf16[256,128], index: 1, kind: input, shape index: {}]   ;;  %s816_s2 = inlined_call_operand.vmem [shape: f32[1,128], index: 2, kind: input, shape index: {}]   ;;  %s817_s3 = inlined_call_operand.vmem [shape: f32[1,128], index: 3, kind: input, shape index: {}]   ;;  %s818_s4 = inlined_call_operand.hbm [shape: bf16[128,256], index: 4, kind: input, shape index: {}]   ;;  %s819_s5 = inlined_call_operand.vmem [shape: f32[1,256], index: 5, kind: input, shape index: {}]   ;;  %s820_s6 = inlined_call_operand.hbm [shape: f32[8,128], index: 6, kind: output, shape index: {0}]   ;;  %s821_s7 = inlined_call_operand.hbm [shape: f32[8,128], index: 7, kind: output, shape index: {1}]   ;;  %s822_s8 = inlined_call_operand.hbm [shape: f32[8,128], index: 8, kind: output, shape index: {2}]  }
   0x1   :  { %15 = vsyncpa [#allocation7], 0 }
   0x2   :  { %16 = vsyncpa [#allocation5], 0 }
   0x3   :  { %17 = vsyncpa [#allocation11], 0  ;;  %s731_s27 = smov [#allocation6]  }
   0x4   :  { %s33_s28 = sshll.u32 %s731_s27, 4  ;;  %s34_s28 = int_to_ptr.vmem [resolvable:$true] %s33_s28 }
   0x5   :  { %s611_s29 = scalar_lea.vmem %s34_s28, 2048  ;;  %p616_p1 = scmp.lt.s32.totalorder %s34_s28, %s34_s28 }
   0x6   :  { %p612_p0 = scmp.ne.s32.totalorder %s34_s28, %s611_s29  ;;  %p617_p2 = scmp.lt.s32.totalorder %s611_s29, %s611_s29 }
   0x8   :  { %p618_p3 = por %p617_p2, %p616_p1 }
   0xa   :  { %p619_p4 = pnand %p618_p3, %p612_p0 }
   0xc   :  { %622 = shalt.err (!%p619_p4)
}
   0xd   :  { %s732_s30 = smov 64   ;;  %s733_s9 = smov 4  }
   0xe   :  { %39 = dma.hbm_to_vmem [thread:$0]  %s815_s1, 2048, %s34_s28, [#allocation7], %s732_s30, %s732_s30, %s733_s9  }
   0xf   :  { %s734_s12 = smov [#allocation3]   ;;  %s735_s14 = smov [#allocation8]  }
  0x10   :  { %s24_s13 = sshll.u32 %s734_s12, 4  ;;  %s49_s15 = sshll.u32 %s735_s14, 4  ;;  %s25_s13 = int_to_ptr.vmem [resolvable:$true] %s24_s13  ;;  %s50_s15 = int_to_ptr.vmem [resolvable:$true] %s49_s15 }
  0x11   :  { %s631_s16 = scalar_lea.vmem %s25_s13, 128  ;;  %p636_p6 = scmp.lt.s32.totalorder %s25_s13, %s25_s13 }
  0x12   :  { %p632_p5 = scmp.ne.s32.totalorder %s25_s13, %s631_s16  ;;  %p637_p7 = scmp.lt.s32.totalorder %s631_s16, %s631_s16 }
  0x14   :  { %p638_p8 = por %p637_p7, %p636_p6 }
  0x16   :  { %p639_p9 = pnand %p638_p8, %p632_p5 }
  0x18   :  { %642 = shalt.err (!%p639_p9)
}
  0x19   :  { %27 = dma.hbm_to_vmem [thread:$0]  %s814_s0, 128, %s25_s13, [#allocation4]  }
  0x1a   :  { %s651_s19 = scalar_lea.vmem %s50_s15, 2048  ;;  %p656_p11 = scmp.lt.s32.totalorder %s50_s15, %s50_s15 }
  0x1b   :  { %p652_p10 = scmp.ne.s32.totalorder %s50_s15, %s651_s19  ;;  %p657_p12 = scmp.lt.s32.totalorder %s651_s19, %s651_s19 }
  0x1d   :  { %p658_p13 = por %p657_p12, %p656_p11 }
  0x1f   :  { %p659_p0 = pnand %p658_p13, %p652_p10 }
  0x21   :  { %662 = shalt.err (!%p659_p0)
}
  0x22   :  { %s736_s1 = smov 128   ;;  %s737_s20 = smov 8  }
  0x23   :  { %55 = dma.hbm_to_vmem [thread:$0]  %s818_s4, 2048, %s50_s15, [#allocation7], %s736_s1, %s736_s1, %s737_s20  }
  0x24   :  { %723 = dma.done.wait [#allocation4], 128  }
  0x25   :  { %724 = vsyncadd [#allocation4], 4294967168 }
  0x26   :  { %725 = dma.done.wait [#allocation7], 4096  }
  0x27   :  { %726 = vsyncadd [#allocation7], 4294963200  ;;  %v557_v0 = vld [vmem:[#allocation6 + $0x78] sm:$0xff]   ;;  %v559_v2 = vld [vmem:[#allocation6 + $0x70] sm:$0xff]   ;;  %v738_v35 = vmov 0   ;;  %v297_v47 = vlaneseq }
  0x28   :  { %v558_v1 = vld [vmem:[#allocation6 + $0x38] sm:$0xff]   ;;  %524 = vmatprep.subr.bf16.mxu0 %v557_v0  ;;  %v560_v3 = vld [vmem:[#allocation6 + $0x30] sm:$0xff]   ;;  %v561_v4 = vld [vmem:[#allocation6 + $0x68] sm:$0xff]   ;;  %419 = vmatprep.mubr.bf16.mxu1 %v738_v35 }
  0x29   :  { %525 = vmatpush3.bf16.msra.mxu0 %v558_v1  ;;  %v562_v5 = vld [vmem:[#allocation6 + $0x28] sm:$0xff]   ;;  %v563_v6 = vld [vmem:[#allocation6 + $0x60] sm:$0xff]   ;;  %v565_v8 = vld [vmem:[#allocation6 + $0x58] sm:$0xff]   ;;  %v298_v48 = vshrl.u32 %v297_v47, 7 }
  0x2a   :  { %526 = vmatprep.subr.bf16.mxu0 %v559_v2  ;;  %v564_v7 = vld [vmem:[#allocation6 + $0x20] sm:$0xff]   ;;  %v566_v9 = vld [vmem:[#allocation6 + $0x18] sm:$0xff]   ;;  %v567_v10 = vld [vmem:[#allocation6 + $0x50] sm:$0xff]  }
  0x2b   :  { %v111_v11 = vld [vmem:[#allocation3] sm:$0xff]  ;;  %v578_v15 = vld [vmem:[#allocation8 + $0x64] ss:$8 sps:$4 sm:$0xff]   ;;  %v568_v16 = vld [vmem:[#allocation6 + $0x10] sm:$0xff]   ;;  %v299_v49 = vsub.s32 0, %v298_v48  ;;  %v303_v51 = vsub.s32 1, %v298_v48 }
  0x2c   :  { %v488_v12 = vcombine.high %v111_v11, %v111_v11  ;;  %v575_v13 = vld [vmem:[#allocation8 + $0x74] ss:$8 sps:$4 sm:$0xff]   ;;  %v577_v14 = vld [vmem:[#allocation8 + $0x70] ss:$8 sps:$4 sm:$0xff]   ;;  %v569_v17 = vld [vmem:[#allocation6 + $0x48] sm:$0xff]   ;;  %v487_v26 = vcombine.low %v111_v11, %v111_v11 }
  0x2d   :  { %527 = vmatpush3.bf16.msra.mxu0 %v560_v3  ;;  %387 = vmatprep.subr.bf16.mxu1 %v575_v13  ;;  %v570_v18 = vld [vmem:[#allocation6 + $0x8] sm:$0xff]   ;;  %v571_v20 = vld [vmem:[#allocation6 + $0x40] sm:$0xff]   ;;  %v581_v21 = vld [vmem:[#allocation8 + $0x54] ss:$8 sps:$4 sm:$0xff]  }
  0x2e   :  { %528 = vmatprep.subr.bf16.mxu0 %v561_v4  ;;  %247 = vmatprep.mubr.bf16.mxu0 %v488_v12  ;;  %v580_v19 = vld [vmem:[#allocation8 + $0x60] ss:$8 sps:$4 sm:$0xff]   ;;  %v583_v22 = vld [vmem:[#allocation8 + $0x50] ss:$8 sps:$4 sm:$0xff]   ;;  %v584_v23 = vld [vmem:[#allocation8 + $0x44] ss:$8 sps:$4 sm:$0xff]  }
  0x2f   :  { %388 = vmatpush1.bf16.msra.mxu1 %v577_v14  ;;  %v572_v24 = vld [vmem:[#allocation6] sm:$0xff]   ;;  %v587_v27 = vld [vmem:[#allocation8 + $0x34] ss:$8 sps:$4 sm:$0xff]   ;;  %v589_v28 = vld [vmem:[#allocation8 + $0x30] ss:$8 sps:$4 sm:$0xff]  }
  0x30   :  { %389 = vmatprep.subr.bf16.mxu1 %v578_v15  ;;  %v586_v25 = vld [vmem:[#allocation8 + $0x40] ss:$8 sps:$4 sm:$0xff]   ;;  %v590_v29 = vld [vmem:[#allocation8 + $0x24] ss:$8 sps:$4 sm:$0xff]   ;;  %v593_v31 = vld [vmem:[#allocation8 + $0x14] ss:$8 sps:$4 sm:$0xff]  }
  0x31   :  { %529 = vmatpush3.bf16.msra.mxu0 %v562_v5  ;;  %v592_v30 = vld [vmem:[#allocation8 + $0x20] ss:$8 sps:$4 sm:$0xff]   ;;  %v595_v32 = vld [vmem:[#allocation8 + $0x10] ss:$8 sps:$4 sm:$0xff]   ;;  %v596_v33 = vld [vmem:[#allocation8 + $0x4] ss:$8 sps:$4 sm:$0xff]  }
  0x32   :  { %530 = vmatprep.subr.bf16.mxu0 %v563_v6  ;;  %v598_v34 = vld [vmem:[#allocation8] ss:$8 sps:$4 sm:$0xff]   ;;  %v505_v38 = vld [vmem:[%s816_s2] ss:$0 sm:$0xff]  ;;  %s739_s2 = smov [#allocation9]  }
  0x33   :  { %390 = vmatpush1.bf16.msra.mxu1 %v580_v19  ;;  %v506_v40 = vld [vmem:[%s817_s3] ss:$0 sm:$0xff]  ;;  %s448_s3 = sshll.u32 %s739_s2, 4  ;;  %s449_s3 = int_to_ptr.vmem [resolvable:$true] %s448_s3 }
  0x34   :  { %391 = vmatprep.subr.bf16.mxu1 %v581_v21  ;;  %v295_v50 = vld [vmem:[%s819_s5] sm:$0x3]  ;;  %s663_s5 = scalar_lea.vmem %s449_s3, 128  ;;  %p668_p2 = scmp.lt.s32.totalorder %s449_s3, %s449_s3 }
  0x35   :  { %531 = vmatpush3.bf16.msra.mxu0 %v564_v7  ;;  %v300_v52 = vrot.slane %v295_v50, %v299_v49  ;;  %v304_v53 = vrot.slane %v295_v50, %v303_v51  ;;  %p664_p1 = scmp.ne.s32.totalorder %s449_s3, %s663_s5  ;;  %p669_p3 = scmp.lt.s32.totalorder %s663_s5, %s663_s5 }
  0x36   :  { %532 = vmatprep.subr.bf16.mxu0 %v565_v8 }
  0x37   :  { %392 = vmatpush1.bf16.msra.mxu1 %v583_v22  ;;  %p670_p4 = por %p669_p3, %p668_p2 }
  0x38   :  { %393 = vmatprep.subr.bf16.mxu1 %v584_v23 }
  0x39   :  { %533 = vmatpush3.bf16.msra.mxu0 %v566_v9  ;;  %p671_p5 = pnand %p670_p4, %p664_p1 }
  0x3a   :  { %534 = vmatprep.subr.bf16.mxu0 %v567_v10 }
  0x3b   :  { %394 = vmatpush1.bf16.msra.mxu1 %v586_v25 }
  0x3c   :  { %395 = vmatprep.subr.bf16.mxu1 %v587_v27 }
  0x3d   :  { %535 = vmatpush3.bf16.msra.mxu0 %v568_v16 }
  0x3e   :  { %536 = vmatprep.subr.bf16.mxu0 %v569_v17 }
  0x3f   :  { %396 = vmatpush1.bf16.msra.mxu1 %v589_v28 }
  0x40   :  { %397 = vmatprep.subr.bf16.mxu1 %v590_v29 }
  0x41   :  { %537 = vmatpush3.bf16.msra.mxu0 %v570_v18 }
  0x42   :  { %538 = vmatprep.subr.bf16.mxu0 %v571_v20 }
  0x43   :  { %398 = vmatpush1.bf16.msra.mxu1 %v592_v30 }
  0x44   :  { %399 = vmatprep.subr.bf16.mxu1 %v593_v31 }
  0x45   :  { %539 = vmatpush3.bf16.msra.mxu0 %v572_v24 }
  0x47   :  { %400 = vmatpush1.bf16.msra.mxu1 %v595_v32 }
  0x48   :  { %248 = vmatmul.mubr.bf16.vlgmr.msra.gmra.mxu0 %v487_v26  ;;  %401 = vmatprep.subr.bf16.mxu1 %v596_v33 }
  0x4b   :  { %402 = vmatpush1.bf16.msra.mxu1 %v598_v34 }
 0x108   :  { %v540_v36 = vpop.f32.mrf.mxu0 }
 0x10a   :  { %v541_v37 = vpop.f32.mrf.mxu0 }
 0x10b   :  { %v542_v39 = vadd.f32 %v541_v37, %v540_v36 }
 0x10c   :  { %v543_v41 = vpop.f32.mrf.mxu0 }
 0x10d   :  { %v268_v42 = vmul.f32 %v542_v39, %v505_v38 }
 0x10e   :  { %v544_v43 = vpop.f32.mrf.mxu0 }
 0x10f   :  { %v276_v44 = vadd.f32 %v506_v40, %v268_v42 }
 0x111   :  { %v277_v45 = vmax.f32 %v276_v44, 0.0 }
 0x113   :  { %v278_v46 = vpack.c.bf16 %v277_v45, %v277_v45 }
 0x115   :  { %420 = vmatmul.mubr.bf16.vlgmr.msra.gmra.mxu1 %v278_v46 }
 0x1d5   :  { %v421_v54 = vpop.f32.mrf.mxu1 }
 0x1d6   :  { %v422_v55 = vadd.f32 %v421_v54, %v300_v52 }
 0x1d7   :  { %v423_v56 = vpop.f32.mrf.mxu1 }
 0x1d8   :  { %439 = vst [vmem:[#allocation9] sm:$0xff] %v422_v55  ;;  %v424_v57 = vadd.f32 %v423_v56, %v304_v53  ;;  %430 = vmax.xlane.f32.xlu0 %v422_v55 }
 0x1d9   :  { %v425_v58 = vpop.f32.mrf.mxu1 }
 0x1da   :  { %v523_v59 = vclamps-f32 %v424_v57, 10.0 }
 0x1db   :  { %v426_v60 = vpop.f32.mrf.mxu1 }
 0x1dc   :  { %441 = vst [vmem:[#allocation12] sm:$0xff] %v523_v59 }
 0x261   :  { %v431_v61 = vpop.xlane.xlu0 %430 }
 0x262   :  { %v432_v62 = vsub.f32 %v422_v55, %v431_v61 }
 0x264   :  { %v433_v63 = vmul.f32 1.442695, %v432_v62 }
 0x266   :  { %599 = vpow2.f32 %v433_v63 }
 0x273   :  { %v600_v0 = vpop.eup %599 }
 0x274   :  { %435 = vadd.xlane.f32.xlu0 %v600_v0 }
 0x275   :  { %674 = shalt.err (!%p671_p5)
}
 0x276   :  { %451 = dma.vmem_to_hbm [thread:$0]  %s449_s3, 128, %s820_s6, [#allocation5]  }
 0x277   :  { %s740_s29 = smov [#allocation10]   ;;  %s741_s9 = smov [#allocation12]  }
 0x278   :  { %s458_s30 = sshll.u32 %s740_s29, 4  ;;  %s468_s10 = sshll.u32 %s741_s9, 4  ;;  %s459_s30 = int_to_ptr.vmem [resolvable:$true] %s458_s30  ;;  %s469_s10 = int_to_ptr.vmem [resolvable:$true] %s468_s10 }
 0x279   :  { %s683_s11 = scalar_lea.vmem %s459_s30, 128  ;;  %p688_p7 = scmp.lt.s32.totalorder %s459_s30, %s459_s30 }
 0x27a   :  { %p684_p6 = scmp.ne.s32.totalorder %s459_s30, %s683_s11  ;;  %p689_p8 = scmp.lt.s32.totalorder %s683_s11, %s683_s11 }
 0x27c   :  { %p690_p9 = por %p689_p8, %p688_p7 }
 0x27e   :  { %p691_p10 = pnand %p690_p9, %p684_p6 }
 0x2fd   :  { %v436_v1 = vpop.xlane.xlu0 %435 }
 0x2fe   :  { %601 = vrcp.f32 %v436_v1 }
 0x30b   :  { %v602_v2 = vpop.eup %601 }
 0x30c   :  { %v438_v3 = vmul.f32 %v602_v2, %v600_v0 }
 0x30e   :  { %440 = vst [vmem:[#allocation10] sm:$0xff] %v438_v3 }
 0x30f   :  { %694 = shalt.err (!%p691_p10)
}
 0x310   :  { %461 = dma.vmem_to_hbm [thread:$0]  %s459_s30, 128, %s821_s7, [#allocation11]  }
 0x311   :  { %s703_s13 = scalar_lea.vmem %s469_s10, 128  ;;  %p708_p12 = scmp.lt.s32.totalorder %s469_s10, %s469_s10 }
 0x312   :  { %p704_p11 = scmp.ne.s32.totalorder %s469_s10, %s703_s13  ;;  %p709_p13 = scmp.lt.s32.totalorder %s703_s13, %s703_s13 }
 0x314   :  { %p710_p0 = por %p709_p13, %p708_p12 }
 0x316   :  { %p711_p1 = pnand %p710_p0, %p704_p11 }
 0x318   :  { %714 = shalt.err (!%p711_p1)
}
 0x319   :  { %471 = dma.vmem_to_hbm [thread:$0]  %s469_s10, 128, %s822_s8, [#allocation11]  }
 0x31a   :  { %727 = dma.done.wait [#allocation5], 128  }
 0x31b   :  { %728 = vsyncadd [#allocation5], 4294967168 }
 0x31c   :  { %729 = dma.done.wait [#allocation11], 256  }
 0x31d   :  { %730 = vsyncadd [#allocation11], 4294967040 }
 0x31e   :  { %481 = vsyncpa [#allocation4], 1 }
 0x31f   :  { %482 = vsyncpa [#allocation7], 1 }
 0x320   :  { %483 = vsyncpa [#allocation5], 1 }
 0x321   :  { %484 = vsyncpa [#allocation11], 1 }

</bundles_post_ra>
